<compile_context>
chip_gen: v6e
topology: v6e:2x2x1
jax: 0.10.0
libtpu: 0.0.40
codegen_flags: <defaults>
</compile_context>

<pallas_src>
import jax
import jax.numpy as jnp
from jax import lax
from jax.experimental import pallas as pl
from jax.experimental.pallas import tpu as pltpu


def _round_up(x, m):
    return (x + m - 1) // m * m


def _log_sigmoid(x):
    # numerically stable logsigmoid, matches F.logsigmoid semantics
    return jnp.minimum(x, 0.0) - jnp.log1p(jnp.exp(-jnp.abs(x)))


def _make_kernel(TB, CK, C, Dp):
    """Kernel for one batch tile of TB rows; CK = C + K context columns."""

    def kernel(center_idx_ref, ctx_idx_ref,    # SMEM scalar-prefetch indices
               in_tab_ref, out_tab_ref,        # VMEM-resident padded tables
               out_ref,                        # VMEM (1, 1, TB) per-row loss sums
               in_buf, ctx_buf):               # VMEM gather scratch
        i = pl.program_id(0)
        base = i * TB

        # ---- fused gather: dynamic VMEM row reads (no DMAs / semaphores) ----
        @pl.loop(0, TB)
        def _gather(r):
            b = base + r
            c_idx = center_idx_ref[b]
            in_buf[pl.ds(r, 1), :] = in_tab_ref[pl.ds(c_idx, 1), :]
            row_off = b * CK
            for c in range(CK):                       # static unroll (CK is small)
                o_idx = ctx_idx_ref[row_off + c]
                ctx_buf[pl.ds(c * TB + r, 1), :] = out_tab_ref[pl.ds(o_idx, 1), :]

        # ---- compute: s[c,r] = <ctx[c,r,:], in[r,:]>, row loss = sum logsig(+/-s) ----
        in_e = in_buf[...].astype(jnp.float32)                    # (TB, Dp)
        ctx = ctx_buf[...].astype(jnp.float32).reshape(CK, TB, Dp)
        s = jnp.sum(ctx * in_e[None, :, :], axis=-1)              # (CK, TB) lane-reduce
        crow = lax.broadcasted_iota(jnp.int32, s.shape, 0)
        z = jnp.where(crow < C, s, -s)                            # negate the score, not the emb
        per_row = jnp.sum(_log_sigmoid(z), axis=0)                # (TB,)
        out_ref[...] = per_row[None, None, :]                     # (1, 1, TB)

    return kernel


def word2vec_loss(in_table, out_table, center_words, pos_words, neg_words,
                  *, tile_b=None):
    """Replicates word2VecModel.forward; returns the scalar loss."""
    V, D = in_table.shape
    B = center_words.shape[0]
    C = pos_words.shape[1]
    K = neg_words.shape[1]
    CK = C + K

    # Lane-dense layout: pad emb dim to a multiple of 128 and vocab to a
    # multiple of 8 on BOTH tables (zeros; pads cancel in the dot products).
    Dp = max(128, _round_up(D, 128))
    Vp = _round_up(V, 8)
    in_tab = jnp.pad(in_table, ((0, Vp - V), (0, Dp - D)))
    out_tab = jnp.pad(out_table, ((0, Vp - V), (0, Dp - D)))
    # bf16 table storage is supported unchanged (kernel upcasts to f32).

    # Batch tile: biggest sublane-friendly tile up to 128 rows, shrunk so the
    # gathered ctx scratch + its f32 upcast temporaries stay well inside VMEM.
    if tile_b is None:
        tile_b = min(128, _round_up(B, 8))
        while tile_b > 8 and tile_b * CK * Dp * 4 * 6 > (8 << 20):
            tile_b //= 2
    TB = tile_b
    B_pad = _round_up(B, TB)
    num_tiles = B_pad // TB

    # Indices: pad batch to a multiple of TB (pad rows use index 0 and are
    # dropped before the mean); concatenate pos+neg into one context stream.
    center = jnp.pad(center_words.astype(jnp.int32), (0, B_pad - B))
    ctx = jnp.concatenate([pos_words, neg_words], axis=1).astype(jnp.int32)  # (B, CK)
    ctx = jnp.pad(ctx, ((0, B_pad - B), (0, 0))).reshape(-1)                 # (B_pad*CK,)

    itemsize = jnp.dtype(in_tab.dtype).itemsize
    kernel = _make_kernel(TB, CK, C, Dp)

    partials = pl.pallas_call(
        kernel,
        grid_spec=pltpu.PrefetchScalarGridSpec(
            num_scalar_prefetch=2,
            grid=(num_tiles,),
            in_specs=[
                # Constant block index -> table DMA'd once, VMEM-resident across tiles.
                pl.BlockSpec((Vp, Dp), lambda i, *_: (0, 0)),    # in_embed table
                pl.BlockSpec((Vp, Dp), lambda i, *_: (0, 0)),    # out_embed table
            ],
            out_specs=pl.BlockSpec((1, 1, TB), lambda i, *_: (i, 0, 0)),
            scratch_shapes=[
                pltpu.VMEM((TB, Dp), in_tab.dtype),        # gathered center rows
                pltpu.VMEM((CK * TB, Dp), out_tab.dtype),  # gathered pos+neg rows
            ],
        ),
        out_shape=jax.ShapeDtypeStruct((num_tiles, 1, TB), jnp.float32),
        compiler_params=pltpu.CompilerParams(
            dimension_semantics=("parallel",),        # independent tiles -> both v7x TCs
            vmem_limit_bytes=32 * 1024 * 1024,        # explicit scoped-VMEM budget
        ),
        cost_estimate=pl.CostEstimate(
            flops=2 * B_pad * CK * Dp,
            transcendentals=2 * B_pad * CK,
            bytes_accessed=2 * Vp * Dp * itemsize
            + B_pad * (CK + 1) * 4
            + num_tiles * TB * 4,
        ),
    )(center, ctx, in_tab, out_tab)

    per_row = partials.reshape(-1)[:B]      # drop padded batch rows
    return -jnp.mean(per_row)               # divide by the true B


def reference_loss(in_table, out_table, center_words, pos_words, neg_words):
    input_emb = jnp.take(in_table, center_words, axis=0)
    pos_emb = jnp.take(out_table, pos_words, axis=0)
    neg_emb = jnp.take(out_table, neg_words, axis=0)
    log_pos = jnp.einsum('bcd,bd->bc', pos_emb, input_emb)
    log_neg = jnp.einsum('bkd,bd->bk', neg_emb, -input_emb)
    per_b = jax.nn.log_sigmoid(log_pos).sum(1) + jax.nn.log_sigmoid(log_neg).sum(1)
    return -per_b.mean()


if __name__ == "__main__":
    VOCAB, EMB = 64, 32          # vocab_size, emb_size
    B, C, K = 8, 4, 8            # batch, context window, negative samples

    key = jax.random.PRNGKey(0)
    k_in, k_out, k_c, k_p, k_n = jax.random.split(key, 5)

    # deterministic parameter init matching nn.Embedding.weight.uniform_(-r, r)
    initrange = 0.5 / EMB
    in_embed = jax.random.uniform(k_in, (VOCAB, EMB), jnp.float32,
                                  minval=-initrange, maxval=initrange)
    out_embed = jax.random.uniform(k_out, (VOCAB, EMB), jnp.float32,
                                   minval=-initrange, maxval=initrange)

    center_words = jax.random.randint(k_c, (B,), 0, VOCAB, dtype=jnp.int32)
    pos_words = jax.random.randint(k_p, (B, C), 0, VOCAB, dtype=jnp.int32)
    neg_words = jax.random.randint(k_n, (B, K), 0, VOCAB, dtype=jnp.int32)

    loss_fn = jax.jit(word2vec_loss)
    loss = jax.block_until_ready(
        loss_fn(in_embed, out_embed, center_words, pos_words, neg_words))

    ref = reference_loss(in_embed, out_embed, center_words, pos_words, neg_words)
    assert jnp.allclose(loss, ref, atol=1e-5, rtol=1e-5), (loss, ref)

    print("KERNEL_OK")
</pallas_src>

<mosaic_0001>
module attributes {stable_mosaic.version = 11 : i64} {
  func.func @kernel(%arg0: i32, %arg1: memref<8xi32, #tpu.memory_space<smem>>, %arg2: memref<96xi32, #tpu.memory_space<smem>>, %arg3: memref<64x128xf32, #tpu.memory_space<vmem>>, %arg4: memref<64x128xf32, #tpu.memory_space<vmem>>, %arg5: memref<1x1x8xf32, #tpu.memory_space<vmem>>, %arg6: memref<8x128xf32, #tpu.memory_space<vmem>>, %arg7: memref<96x128xf32, #tpu.memory_space<vmem>>) attributes {dimension_semantics = [#tpu.dimension_semantics<parallel>], iteration_bounds = array<i64: 1>, scalar_prefetch = 2 : i64, scratch_operands = 2 : i64, tpu.core_type = #tpu.core_type<tc>, window_params = [{pipeline_mode = #tpu.pipeline_mode<synchronous>, transform_indices = @transform_0, window_bounds = array<i64: 64, 128>}, {pipeline_mode = #tpu.pipeline_mode<synchronous>, transform_indices = @transform_1, window_bounds = array<i64: 64, 128>}, {transform_indices = @transform_2, window_bounds = array<i64: 1, 1, 8>}]} {
    %c8_i32 = arith.constant 8 : i32
    %0 = arith.muli %arg0, %c8_i32 : i32
    %c0_i32 = arith.constant 0 : i32
    %c8_i32_0 = arith.constant 8 : i32
    %1 = arith.addi %c0_i32, %c8_i32_0 : i32
    %c1_i32 = arith.constant 1 : i32
    scf.for %arg8 = %c0_i32 to %1 step %c1_i32  : i32 {
      %c1_i32_12 = arith.constant 1 : i32
      %26 = arith.muli %arg8, %c1_i32_12 : i32
      %c0_i32_13 = arith.constant 0 : i32
      %27 = arith.addi %c0_i32_13, %26 : i32
      %28 = arith.addi %0, %27 : i32
      %29 = arith.index_cast %28 : i32 to index
      %30 = memref.load %arg1[%29] : memref<8xi32, #tpu.memory_space<smem>>
      %31 = arith.index_cast %30 : i32 to index
      %c0_14 = arith.constant 0 : index
      %32 = vector.load %arg3[%31, %c0_14] : memref<64x128xf32, #tpu.memory_space<vmem>>, vector<1x128xf32>
      %33 = arith.index_cast %27 : i32 to index
      %c0_15 = arith.constant 0 : index
      %34 = vector.load %arg6[%33, %c0_15] : memref<8x128xf32, #tpu.memory_space<vmem>>, vector<1x128xf32>
      tpu.vector_store %arg6[%33, %c0_15], %32 {strides = array<i32>} : memref<8x128xf32, #tpu.memory_space<vmem>>, vector<1x128xf32>,
      %c12_i32 = arith.constant 12 : i32
      %35 = arith.muli %28, %c12_i32 : i32
      %c0_i32_16 = arith.constant 0 : i32
      %36 = arith.addi %35, %c0_i32_16 : i32
      %37 = arith.index_cast %36 : i32 to index
      %38 = memref.load %arg2[%37] : memref<96xi32, #tpu.memory_space<smem>>
      %39 = arith.index_cast %38 : i32 to index
      %c0_17 = arith.constant 0 : index
      %40 = vector.load %arg4[%39, %c0_17] : memref<64x128xf32, #tpu.memory_space<vmem>>, vector<1x128xf32>
      %c0_i32_18 = arith.constant 0 : i32
      %41 = arith.addi %c0_i32_18, %27 : i32
      %42 = arith.index_cast %41 : i32 to index
      %c0_19 = arith.constant 0 : index
      %43 = vector.load %arg7[%42, %c0_19] : memref<96x128xf32, #tpu.memory_space<vmem>>, vector<1x128xf32>
      tpu.vector_store %arg7[%42, %c0_19], %40 {strides = array<i32>} : memref<96x128xf32, #tpu.memory_space<vmem>>, vector<1x128xf32>,
      %c1_i32_20 = arith.constant 1 : i32
      %44 = arith.addi %35, %c1_i32_20 : i32
      %45 = arith.index_cast %44 : i32 to index
      %46 = memref.load %arg2[%45] : memref<96xi32, #tpu.memory_space<smem>>
      %47 = arith.index_cast %46 : i32 to index
      %c0_21 = arith.constant 0 : index
      %48 = vector.load %arg4[%47, %c0_21] : memref<64x128xf32, #tpu.memory_space<vmem>>, vector<1x128xf32>
      %c8_i32_22 = arith.constant 8 : i32
      %49 = arith.addi %c8_i32_22, %27 : i32
      %50 = arith.index_cast %49 : i32 to index
      %c0_23 = arith.constant 0 : index
      %51 = vector.load %arg7[%50, %c0_23] : memref<96x128xf32, #tpu.memory_space<vmem>>, vector<1x128xf32>
      tpu.vector_store %arg7[%50, %c0_23], %48 {strides = array<i32>} : memref<96x128xf32, #tpu.memory_space<vmem>>, vector<1x128xf32>,
      %c2_i32 = arith.constant 2 : i32
      %52 = arith.addi %35, %c2_i32 : i32
      %53 = arith.index_cast %52 : i32 to index
      %54 = memref.load %arg2[%53] : memref<96xi32, #tpu.memory_space<smem>>
      %55 = arith.index_cast %54 : i32 to index
      %c0_24 = arith.constant 0 : index
      %56 = vector.load %arg4[%55, %c0_24] : memref<64x128xf32, #tpu.memory_space<vmem>>, vector<1x128xf32>
      %c16_i32 = arith.constant 16 : i32
      %57 = arith.addi %c16_i32, %27 : i32
      %58 = arith.index_cast %57 : i32 to index
      %c0_25 = arith.constant 0 : index
      %59 = vector.load %arg7[%58, %c0_25] : memref<96x128xf32, #tpu.memory_space<vmem>>, vector<1x128xf32>
      tpu.vector_store %arg7[%58, %c0_25], %56 {strides = array<i32>} : memref<96x128xf32, #tpu.memory_space<vmem>>, vector<1x128xf32>,
      %c3_i32 = arith.constant 3 : i32
      %60 = arith.addi %35, %c3_i32 : i32
      %61 = arith.index_cast %60 : i32 to index
      %62 = memref.load %arg2[%61] : memref<96xi32, #tpu.memory_space<smem>>
      %63 = arith.index_cast %62 : i32 to index
      %c0_26 = arith.constant 0 : index
      %64 = vector.load %arg4[%63, %c0_26] : memref<64x128xf32, #tpu.memory_space<vmem>>, vector<1x128xf32>
      %c24_i32 = arith.constant 24 : i32
      %65 = arith.addi %c24_i32, %27 : i32
      %66 = arith.index_cast %65 : i32 to index
      %c0_27 = arith.constant 0 : index
      %67 = vector.load %arg7[%66, %c0_27] : memref<96x128xf32, #tpu.memory_space<vmem>>, vector<1x128xf32>
      tpu.vector_store %arg7[%66, %c0_27], %64 {strides = array<i32>} : memref<96x128xf32, #tpu.memory_space<vmem>>, vector<1x128xf32>,
      %c4_i32_28 = arith.constant 4 : i32
      %68 = arith.addi %35, %c4_i32_28 : i32
      %69 = arith.index_cast %68 : i32 to index
      %70 = memref.load %arg2[%69] : memref<96xi32, #tpu.memory_space<smem>>
      %71 = arith.index_cast %70 : i32 to index
      %c0_29 = arith.constant 0 : index
      %72 = vector.load %arg4[%71, %c0_29] : memref<64x128xf32, #tpu.memory_space<vmem>>, vector<1x128xf32>
      %c32_i32 = arith.constant 32 : i32
      %73 = arith.addi %c32_i32, %27 : i32
      %74 = arith.index_cast %73 : i32 to index
      %c0_30 = arith.constant 0 : index
      %75 = vector.load %arg7[%74, %c0_30] : memref<96x128xf32, #tpu.memory_space<vmem>>, vector<1x128xf32>
      tpu.vector_store %arg7[%74, %c0_30], %72 {strides = array<i32>} : memref<96x128xf32, #tpu.memory_space<vmem>>, vector<1x128xf32>,
      %c5_i32 = arith.constant 5 : i32
      %76 = arith.addi %35, %c5_i32 : i32
      %77 = arith.index_cast %76 : i32 to index
      %78 = memref.load %arg2[%77] : memref<96xi32, #tpu.memory_space<smem>>
      %79 = arith.index_cast %78 : i32 to index
      %c0_31 = arith.constant 0 : index
      %80 = vector.load %arg4[%79, %c0_31] : memref<64x128xf32, #tpu.memory_space<vmem>>, vector<1x128xf32>
      %c40_i32 = arith.constant 40 : i32
      %81 = arith.addi %c40_i32, %27 : i32
      %82 = arith.index_cast %81 : i32 to index
      %c0_32 = arith.constant 0 : index
      %83 = vector.load %arg7[%82, %c0_32] : memref<96x128xf32, #tpu.memory_space<vmem>>, vector<1x128xf32>
      tpu.vector_store %arg7[%82, %c0_32], %80 {strides = array<i32>} : memref<96x128xf32, #tpu.memory_space<vmem>>, vector<1x128xf32>,
      %c6_i32 = arith.constant 6 : i32
      %84 = arith.addi %35, %c6_i32 : i32
      %85 = arith.index_cast %84 : i32 to index
      %86 = memref.load %arg2[%85] : memref<96xi32, #tpu.memory_space<smem>>
      %87 = arith.index_cast %86 : i32 to index
      %c0_33 = arith.constant 0 : index
      %88 = vector.load %arg4[%87, %c0_33] : memref<64x128xf32, #tpu.memory_space<vmem>>, vector<1x128xf32>
      %c48_i32 = arith.constant 48 : i32
      %89 = arith.addi %c48_i32, %27 : i32
      %90 = arith.index_cast %89 : i32 to index
      %c0_34 = arith.constant 0 : index
      %91 = vector.load %arg7[%90, %c0_34] : memref<96x128xf32, #tpu.memory_space<vmem>>, vector<1x128xf32>
      tpu.vector_store %arg7[%90, %c0_34], %88 {strides = array<i32>} : memref<96x128xf32, #tpu.memory_space<vmem>>, vector<1x128xf32>,
      %c7_i32 = arith.constant 7 : i32
      %92 = arith.addi %35, %c7_i32 : i32
      %93 = arith.index_cast %92 : i32 to index
      %94 = memref.load %arg2[%93] : memref<96xi32, #tpu.memory_space<smem>>
      %95 = arith.index_cast %94 : i32 to index
      %c0_35 = arith.constant 0 : index
      %96 = vector.load %arg4[%95, %c0_35] : memref<64x128xf32, #tpu.memory_space<vmem>>, vector<1x128xf32>
      %c56_i32 = arith.constant 56 : i32
      %97 = arith.addi %c56_i32, %27 : i32
      %98 = arith.index_cast %97 : i32 to index
      %c0_36 = arith.constant 0 : index
      %99 = vector.load %arg7[%98, %c0_36] : memref<96x128xf32, #tpu.memory_space<vmem>>, vector<1x128xf32>
      tpu.vector_store %arg7[%98, %c0_36], %96 {strides = array<i32>} : memref<96x128xf32, #tpu.memory_space<vmem>>, vector<1x128xf32>,
      %c8_i32_37 = arith.constant 8 : i32
      %100 = arith.addi %35, %c8_i32_37 : i32
      %101 = arith.index_cast %100 : i32 to index
      %102 = memref.load %arg2[%101] : memref<96xi32, #tpu.memory_space<smem>>
      %103 = arith.index_cast %102 : i32 to index
      %c0_38 = arith.constant 0 : index
      %104 = vector.load %arg4[%103, %c0_38] : memref<64x128xf32, #tpu.memory_space<vmem>>, vector<1x128xf32>
      %c64_i32 = arith.constant 64 : i32
      %105 = arith.addi %c64_i32, %27 : i32
      %106 = arith.index_cast %105 : i32 to index
      %c0_39 = arith.constant 0 : index
      %107 = vector.load %arg7[%106, %c0_39] : memref<96x128xf32, #tpu.memory_space<vmem>>, vector<1x128xf32>
      tpu.vector_store %arg7[%106, %c0_39], %104 {strides = array<i32>} : memref<96x128xf32, #tpu.memory_space<vmem>>, vector<1x128xf32>,
      %c9_i32 = arith.constant 9 : i32
      %108 = arith.addi %35, %c9_i32 : i32
      %109 = arith.index_cast %108 : i32 to index
      %110 = memref.load %arg2[%109] : memref<96xi32, #tpu.memory_space<smem>>
      %111 = arith.index_cast %110 : i32 to index
      %c0_40 = arith.constant 0 : index
      %112 = vector.load %arg4[%111, %c0_40] : memref<64x128xf32, #tpu.memory_space<vmem>>, vector<1x128xf32>
      %c72_i32 = arith.constant 72 : i32
      %113 = arith.addi %c72_i32, %27 : i32
      %114 = arith.index_cast %113 : i32 to index
      %c0_41 = arith.constant 0 : index
      %115 = vector.load %arg7[%114, %c0_41] : memref<96x128xf32, #tpu.memory_space<vmem>>, vector<1x128xf32>
      tpu.vector_store %arg7[%114, %c0_41], %112 {strides = array<i32>} : memref<96x128xf32, #tpu.memory_space<vmem>>, vector<1x128xf32>,
      %c10_i32 = arith.constant 10 : i32
      %116 = arith.addi %35, %c10_i32 : i32
      %117 = arith.index_cast %116 : i32 to index
      %118 = memref.load %arg2[%117] : memref<96xi32, #tpu.memory_space<smem>>
      %119 = arith.index_cast %118 : i32 to index
      %c0_42 = arith.constant 0 : index
      %120 = vector.load %arg4[%119, %c0_42] : memref<64x128xf32, #tpu.memory_space<vmem>>, vector<1x128xf32>
      %c80_i32 = arith.constant 80 : i32
      %121 = arith.addi %c80_i32, %27 : i32
      %122 = arith.index_cast %121 : i32 to index
      %c0_43 = arith.constant 0 : index
      %123 = vector.load %arg7[%122, %c0_43] : memref<96x128xf32, #tpu.memory_space<vmem>>, vector<1x128xf32>
      tpu.vector_store %arg7[%122, %c0_43], %120 {strides = array<i32>} : memref<96x128xf32, #tpu.memory_space<vmem>>, vector<1x128xf32>,
      %c11_i32 = arith.constant 11 : i32
      %124 = arith.addi %35, %c11_i32 : i32
      %125 = arith.index_cast %124 : i32 to index
      %126 = memref.load %arg2[%125] : memref<96xi32, #tpu.memory_space<smem>>
      %127 = arith.index_cast %126 : i32 to index
      %c0_44 = arith.constant 0 : index
      %128 = vector.load %arg4[%127, %c0_44] : memref<64x128xf32, #tpu.memory_space<vmem>>, vector<1x128xf32>
      %c88_i32 = arith.constant 88 : i32
      %129 = arith.addi %c88_i32, %27 : i32
      %130 = arith.index_cast %129 : i32 to index
      %c0_45 = arith.constant 0 : index
      %131 = vector.load %arg7[%130, %c0_45] : memref<96x128xf32, #tpu.memory_space<vmem>>, vector<1x128xf32>
      tpu.vector_store %arg7[%130, %c0_45], %128 {strides = array<i32>} : memref<96x128xf32, #tpu.memory_space<vmem>>, vector<1x128xf32>,
    }
    %c8_i32_1 = arith.constant 8 : i32
    %c0 = arith.constant 0 : index
    %c0_2 = arith.constant 0 : index
    %2 = vector.load %arg6[%c0, %c0_2] : memref<8x128xf32, #tpu.memory_space<vmem>>, vector<8x128xf32>
    %c0_3 = arith.constant 0 : index
    %c0_4 = arith.constant 0 : index
    %3 = vector.load %arg7[%c0_3, %c0_4] : memref<96x128xf32, #tpu.memory_space<vmem>>, vector<96x128xf32>
    %4 = vector.shape_cast %3 : vector<96x128xf32> to vector<12x8x128xf32>
    %5 = vector.shape_cast %2 : vector<8x128xf32> to vector<1x8x128xf32>
    %6 = vector.broadcast %5 : vector<1x8x128xf32> to vector<12x8x128xf32>
    %7 = arith.mulf %4, %6 : vector<12x8x128xf32>
    %cst = arith.constant dense<0.000000e+00> : vector<12x8xf32>
    %8 = vector.multi_reduction <add>, %7, %cst [2] : vector<12x8x128xf32> to vector<12x8xf32>
    %9 = tpu.iota {dimensions = array<i32: 0>} : vector<12x8xi32>
    %c4_i32 = arith.constant 4 : i32
    %10 = vector.broadcast %c4_i32 : i32 to vector<12x8xi32>
    %11 = arith.cmpi slt, %9, %10 : vector<12x8xi32>
    %cst_5 = arith.constant 0.000000e+00 : f32
    %12 = vector.broadcast %cst_5 : f32 to vector<12x8xf32>
    %13 = arith.subf %12, %8 : vector<12x8xf32>
    %14 = arith.select %11, %8, %13 : vector<12x8xi1>, vector<12x8xf32>
    %cst_6 = arith.constant 0.000000e+00 : f32
    %15 = vector.broadcast %cst_6 : f32 to vector<12x8xf32>
    %16 = arith.minimumf %14, %15 : vector<12x8xf32>
    %17 = math.absf %14 : vector<12x8xf32>
    %cst_7 = arith.constant 0.000000e+00 : f32
    %18 = vector.broadcast %cst_7 : f32 to vector<12x8xf32>
    %19 = arith.subf %18, %17 : vector<12x8xf32>
    %20 = math.exp %19 : vector<12x8xf32>
    %21 = math.log1p %20 : vector<12x8xf32>
    %22 = arith.subf %16, %21 : vector<12x8xf32>
    %cst_8 = arith.constant dense<0.000000e+00> : vector<8xf32>
    %23 = vector.multi_reduction <add>, %22, %cst_8 [0] : vector<12x8xf32> to vector<8xf32>
    %24 = vector.shape_cast %23 : vector<8xf32> to vector<1x1x8xf32>
    %c0_9 = arith.constant 0 : index
    %c0_10 = arith.constant 0 : index
    %c0_11 = arith.constant 0 : index
    %25 = vector.load %arg5[%c0_9, %c0_10, %c0_11] : memref<1x1x8xf32, #tpu.memory_space<vmem>>, vector<1x1x8xf32>
    tpu.vector_store %arg5[%c0_9, %c0_10, %c0_11], %24 {strides = array<i32>} : memref<1x1x8xf32, #tpu.memory_space<vmem>>, vector<1x1x8xf32>,
    return
  }
  func.func @transform_0(%arg0: i32, %arg1: memref<8xi32, #tpu.memory_space<smem>>, %arg2: memref<96xi32, #tpu.memory_space<smem>>) -> (i32, i32) {
    %c0_i32 = arith.constant 0 : i32
    %c0_i32_0 = arith.constant 0 : i32
    %c0_i32_1 = arith.constant 0 : i32
    return %c0_i32, %c0_i32_0 : i32, i32
  }
  func.func @transform_1(%arg0: i32, %arg1: memref<8xi32, #tpu.memory_space<smem>>, %arg2: memref<96xi32, #tpu.memory_space<smem>>) -> (i32, i32) {
    %c0_i32 = arith.constant 0 : i32
    %c0_i32_0 = arith.constant 0 : i32
    %c0_i32_1 = arith.constant 0 : i32
    return %c0_i32, %c0_i32_0 : i32, i32
  }
  func.func @transform_2(%arg0: i32, %arg1: memref<8xi32, #tpu.memory_space<smem>>, %arg2: memref<96xi32, #tpu.memory_space<smem>>) -> (i32, i32, i32) {
    %c0_i32 = arith.constant 0 : i32
    %c0_i32_0 = arith.constant 0 : i32
    %c0_i32_1 = arith.constant 0 : i32
    return %arg0, %c0_i32, %c0_i32_0 : i32, i32, i32
  }
}

</mosaic_0001>

<bundles_post_ra>
// kernel: word2vec_loss.1
= control target key start
LH: loop header
LB: loop body
LE: loop exit
PB: predicated region body
PF: predicated region fallthrough
CT: control target
= control target key end

     0   :  { %s642_s0 = inlined_call_operand.vmem [shape: s32[8], index: 0, kind: input, shape index: {}]   ;;  %s643_s2 = inlined_call_operand.vmem [shape: f32[64,128], index: 2, kind: input, shape index: {}]   ;;  %s644_s3 = inlined_call_operand.vmem [shape: f32[64,128], index: 3, kind: input, shape index: {}]   ;;  %s645_s4 = inlined_call_operand.vmem [shape: f32[1,1,8], index: 4, kind: output, shape index: {}]   ;;  %s646_s1 = inlined_call_operand.vmem [shape: s32[96], index: 1, kind: input, shape index: {}]  }
   0x1   :  { %s9_s17 = sshll.u32 %s642_s0, 4  ;;  %s13_s20 = sshll.u32 %s646_s1, 4  ;;  %s10_s17 = int_to_ptr.vmem [resolvable:$true] %s9_s17  ;;  %s14_s20 = int_to_ptr.vmem [resolvable:$true] %s13_s20 }
   0x2   :  { %s458_s21 = scalar_lea.vmem %s10_s17, 16  ;;  %p463_p1 = scmp.lt.s32.totalorder %s10_s17, %s10_s17 }
   0x3   :  { %p459_p0 = scmp.ne.s32.totalorder %s10_s17, %s458_s21  ;;  %p464_p2 = scmp.lt.s32.totalorder %s458_s21, %s458_s21 }
   0x5   :  { %p465_p3 = por %p464_p2, %p463_p1 }
   0x7   :  { %p466_p4 = pnand %p465_p3, %p459_p0 }
   0x9   :  { %469 = shalt.err (!%p466_p4)  }
   0xa   :  { %s492_s22 = smov [#allocation5]   ;;  %s470_s23 = scalar_lea.vmem %s14_s20, 16 }
   0xb   :  { %12 = dma.vmem_to_smem %s10_s17, 16, %s492_s22, [#allocation4] }
   0xc   :  { %p471_p5 = scmp.ne.s32.totalorder %s14_s20, %s470_s23  ;;  %p475_p6 = scmp.lt.s32.totalorder %s14_s20, %s14_s20 }
   0xd   :  { %p476_p7 = scmp.lt.s32.totalorder %s470_s23, %s470_s23 }
   0xf   :  { %p477_p8 = por %p476_p7, %p475_p6 }
  0x11   :  { %p478_p9 = pnand %p477_p8, %p471_p5 }
  0x13   :  { %481 = shalt.err (!%p478_p9)  }
  0x14   :  { %s493_s0 = smov [#allocation6]  }
  0x15   :  { %16 = dma.vmem_to_smem %s14_s20, 16, %s493_s0, [#allocation4] }
  0x16   :  { %486 = dma.done.wait [#allocation4], 32 }
  0x17   :  { %487 = vsyncadd [#allocation4], 4294967264 }
  0x18   :  { %18 = sfence }
  0x19   :  { %s525_s1 = smov 0  }
  0x1a LB: > { %s31_s24 = sld [smem:[#allocation5 + %s490_s1]]  ;;  %s532_s25 = smul.u32 12, %s490_s1  ;;  %s490_s1 = sphi %s525_s1, %s29_s1  }
  0x1b   : > { %s34_s12 = scalar_lea.vmem [#allocation2], %s490_s1  ;;  %s552_s23 = scalar_lea.vmem [#allocation3], %s490_s1 }
  0x1c   : > { %s37_s26 = sld [smem:[#allocation6 + %s532_s25]]  ;;  %s42_s27 = sadd.s32 1, %s532_s25 }
  0x1d   : > { %s43_s28 = sld [smem:[#allocation6 + %s42_s27]]  ;;  %s49_s29 = sadd.s32 2, %s532_s25 }
  0x1e   : > { %s50_s30 = sld [smem:[#allocation6 + %s49_s29]]  ;;  %s56_s5 = sadd.s32 3, %s532_s25 }
  0x1f   : > { %s57_s9 = sld [smem:[#allocation6 + %s56_s5]]  ;;  %s63_s10 = sadd.s32 4, %s532_s25 }
  0x20   : > { %s32_s8 = scalar_lea.vmem %s643_s2, %s31_s24  ;;  %s70_s11 = sadd.s32 5, %s532_s25 }
  0x21   : > { %v33_v0 = vld [vmem:[%s32_s8] sm:$0x1]  ;;  %s64_s13 = sld [smem:[#allocation6 + %s63_s10]]  ;;  %s77_s14 = sadd.s32 6, %s532_s25 }
  0x22   : > { %35 = vst [vmem:[%s34_s12] sm:$0x1] %v33_v0  ;;  %s38_s17 = scalar_lea.vmem %s644_s3, %s37_s26  ;;  %s71_s18 = sld [smem:[#allocation6 + %s70_s11]] }
  0x23   : > { %v39_v1 = vld [vmem:[%s38_s17] sm:$0x1]  ;;  %s44_s21 = scalar_lea.vmem %s644_s3, %s43_s28  ;;  %s78_s22 = sld [smem:[#allocation6 + %s77_s14]] }
  0x24   : > { %41 = vst [vmem:[%s552_s23] sm:$0x1] %v39_v1  ;;  %v45_v2 = vld [vmem:[%s44_s21] sm:$0x1]  ;;  %s51_s26 = scalar_lea.vmem %s644_s3, %s50_s30  ;;  %s84_s27 = sadd.s32 7, %s532_s25 }
  0x25   : > { %429 = vst [vmem:[%s552_s23 + $0x8] sm:$0x1] %v45_v2  ;;  %v52_v3 = vld [vmem:[%s51_s26] sm:$0x1]  ;;  %s58_s28 = scalar_lea.vmem %s644_s3, %s57_s9  ;;  %s85_s6 = sld [smem:[#allocation6 + %s84_s27]] }
  0x26   : > { %430 = vst [vmem:[%s552_s23 + $0x10] sm:$0x1] %v52_v3  ;;  %v59_v4 = vld [vmem:[%s58_s28] sm:$0x1]  ;;  %s91_s7 = sadd.s32 8, %s532_s25  ;;  %s98_s8 = sadd.s32 9, %s532_s25 }
  0x27   : > { %431 = vst [vmem:[%s552_s23 + $0x18] sm:$0x1] %v59_v4  ;;  %s65_s11 = scalar_lea.vmem %s644_s3, %s64_s13  ;;  %s92_s12 = sld [smem:[#allocation6 + %s91_s7]] }
  0x28   : > { %v66_v5 = vld [vmem:[%s65_s11] sm:$0x1]  ;;  %s72_s9 = scalar_lea.vmem %s644_s3, %s71_s18  ;;  %s99_s16 = sld [smem:[#allocation6 + %s98_s8]] }
  0x29   : > { %432 = vst [vmem:[%s552_s23 + $0x20] sm:$0x1] %v66_v5  ;;  %v73_v6 = vld [vmem:[%s72_s9] sm:$0x1]  ;;  %s79_s20 = scalar_lea.vmem %s644_s3, %s78_s22  ;;  %s105_s21 = sadd.s32 10, %s532_s25 }
  0x2a   : > { %433 = vst [vmem:[%s552_s23 + $0x28] sm:$0x1] %v73_v6  ;;  %v80_v7 = vld [vmem:[%s79_s20] sm:$0x1]  ;;  %s106_s13 = sld [smem:[#allocation6 + %s105_s21]]  ;;  %s112_s0 = sadd.s32 11, %s532_s25 }
  0x2b   : > { %434 = vst [vmem:[%s552_s23 + $0x30] sm:$0x1] %v80_v7  ;;  %s86_s18 = scalar_lea.vmem %s644_s3, %s85_s6  ;;  %s113_s27 = sld [smem:[#allocation6 + %s112_s0]] }
  0x2c   : > { %v87_v8 = vld [vmem:[%s86_s18] sm:$0x1]  ;;  %s29_s1 = sadd.s32 1, %s490_s1  }
  0x2d   : > { %435 = vst [vmem:[%s552_s23 + $0x38] sm:$0x1] %v87_v8  ;;  %s93_s22 = scalar_lea.vmem %s644_s3, %s92_s12  ;;  %p26_p10 = scmp.ge.s32.totalorder %s29_s1, 8  }
  0x2e   : > { %v94_v9 = vld [vmem:[%s93_s22] sm:$0x1]  ;;  %s100_s8 = scalar_lea.vmem %s644_s3, %s99_s16  ;;  %v168_v38 = vlaneseq (%p26_p10)  ;;  %vm247_vm0 = vcmask (%p26_p10), 1041409   ;;  %vm249_vm1 = vcmask (%p26_p10), 1042434   ;;  %vm251_vm2 = vcmask (%p26_p10), 1043459  }
  0x2f   : > { %436 = vst [vmem:[%s552_s23 + $0x40] sm:$0x1] %v94_v9  ;;  %v101_v10 = vld [vmem:[%s100_s8] sm:$0x1]  ;;  %28 = sbr.rel (!%p26_p10) target bundleno = 26 (0x1a), region = 61  ;;  %vm253_vm3 = vcmask (%p26_p10), 1044484  }
  0x30   : > { %437 = vst [vmem:[%s552_s23 + $0x48] sm:$0x1] %v101_v10  ;;  %s107_s30 = scalar_lea.vmem %s644_s3, %s106_s13  ;;  %v119_v13 = vld [vmem:[#allocation2] sm:$0xff] (%p26_p10)  ;;  %v604_v39 = vshrl.u32 (%p26_p10), %v168_v38, 7  ;;  %v198_v40 = vand.u32 (%p26_p10), 127, %v168_v38  ;;  %vm255_vm4 = vcmask (%p26_p10), 1045509  }
  0x31   : > { %v108_v11 = vld [vmem:[%s107_s30] sm:$0x1]  ;;  %s114_s14 = scalar_lea.vmem %s644_s3, %s113_s27  ;;  %vm257_vm5 = vcmask (%p26_p10), 1046534   ;;  %vm259_vm6 = vcmask (%p26_p10), 1047559   ;;  %vm370_vm10 = vcmask (%p26_p10), 64512   ;;  %vm372_vm11 = vcmask (%p26_p10), 60416  }
  0x32   : > { %438 = vst [vmem:[%s552_s23 + $0x50] sm:$0x1] %v108_v11  ;;  %v115_v12 = vld [vmem:[%s114_s14] sm:$0x1]  ;;  %v607_v43 = vsub.s32 (%p26_p10), %v198_v40, %v604_v39  ;;  %vm171_vm7 = vcmp.lt.s32.totalorder (%p26_p10), %v604_v39, 4  ;;  %vm381_vm12 = vcmask (%p26_p10), 57344  }
  0x33   : > { %439 = vst [vmem:[%s552_s23 + $0x58] sm:$0x1] %v115_v12 }
  0x3a   :  { %v122_v14 = vld [vmem:[#allocation3 + $0x10] sm:$0xff]  ;;  %v120_v15 = vld [vmem:[#allocation3] sm:$0xff]  ;;  %v123_v18 = vld [vmem:[#allocation3 + $0x18] sm:$0xff] }
  0x3b   :  { %v134_v16 = vmul.f32 %v122_v14, %v119_v13  ;;  %v132_v17 = vmul.f32 %v120_v15, %v119_v13  ;;  %v121_v19 = vld [vmem:[#allocation3 + $0x8] sm:$0xff]  ;;  %v135_v20 = vmul.f32 %v123_v18, %v119_v13  ;;  %v124_v23 = vld [vmem:[#allocation3 + $0x20] sm:$0xff]  ;;  %v126_v27 = vld [vmem:[#allocation3 + $0x30] sm:$0xff] }
  0x3c   :  { %v133_v21 = vmul.f32 %v121_v19, %v119_v13  ;;  %v125_v22 = vld [vmem:[#allocation3 + $0x28] sm:$0xff]  ;;  %v136_v25 = vmul.f32 %v124_v23, %v119_v13  ;;  %v128_v26 = vld [vmem:[#allocation3 + $0x40] sm:$0xff]  ;;  %v138_v29 = vmul.f32 %v126_v27, %v119_v13  ;;  %v127_v30 = vld [vmem:[#allocation3 + $0x38] sm:$0xff] }
  0x3d   :  { %148 = vadd.xlane.f32.xlu1 %v134_v16  ;;  %144 = vadd.xlane.f32.xlu0 %v132_v17  ;;  %v137_v24 = vmul.f32 %v125_v22, %v119_v13  ;;  %v140_v28 = vmul.f32 %v128_v26, %v119_v13  ;;  %v129_v31 = vld [vmem:[#allocation3 + $0x48] sm:$0xff]  ;;  %v139_v32 = vmul.f32 %v127_v30, %v119_v13  ;;  %v130_v34 = vld [vmem:[#allocation3 + $0x50] sm:$0xff]  ;;  %v131_v35 = vld [vmem:[#allocation3 + $0x58] sm:$0xff] }
  0x3e   :  { %v141_v33 = vmul.f32 %v129_v31, %v119_v13  ;;  %v142_v36 = vmul.f32 %v130_v34, %v119_v13  ;;  %v143_v37 = vmul.f32 %v131_v35, %v119_v13 }
  0x41   :  { %150 = vadd.xlane.f32.xlu1 %v135_v20  ;;  %146 = vadd.xlane.f32.xlu0 %v133_v21 }
  0x45   :  { %154 = vadd.xlane.f32.xlu1 %v137_v24  ;;  %152 = vadd.xlane.f32.xlu0 %v136_v25 }
  0x49   :  { %160 = vadd.xlane.f32.xlu1 %v140_v28  ;;  %156 = vadd.xlane.f32.xlu0 %v138_v29 }
  0x4d   :  { %158 = vadd.xlane.f32.xlu1 %v139_v32  ;;  %162 = vadd.xlane.f32.xlu0 %v141_v33 }
  0x51   :  { %164 = vadd.xlane.f32.xlu0 %v142_v36  ;;  %166 = vadd.xlane.f32.xlu1 %v143_v37 }
  0xc6   :  { %v149_v41 = vpop.xlane.xlu1 %148  ;;  %v145_v42 = vpop.xlane.xlu0 %144 }
  0xc7   :  { %v173_v44 = vsub.f32 0.0, %v145_v42  ;;  %v175_v45 = vsub.f32 0.0, %v149_v41  ;;  %v202_v48 = vrot.slane %v145_v42, %v607_v43  ;;  %v210_v55 = vrot.slane %v149_v41, %v607_v43 }
  0xc9   :  { %v281_v52 = vrot.slane %v173_v44, %v607_v43  ;;  %v289_v56 = vrot.slane %v175_v45, %v607_v43 }
  0xca   :  { %v151_v46 = vpop.xlane.xlu1 %150  ;;  %v147_v47 = vpop.xlane.xlu0 %146 }
  0xcb   :  { %v176_v49 = vsub.f32 0.0, %v151_v46  ;;  %v174_v50 = vsub.f32 0.0, %v147_v47  ;;  %v206_v51 = vrot.slane %v147_v47, %v607_v43  ;;  %v214_v59 = vrot.slane %v151_v46, %v607_v43 }
  0xcd   :  { %v248_v53 = vsel %vm247_vm0, %v206_v51, %v202_v48  ;;  %v285_v54 = vrot.slane %v174_v50, %v607_v43  ;;  %v293_v60 = vrot.slane %v176_v49, %v607_v43 }
  0xce   :  { %v155_v57 = vpop.xlane.xlu1 %154  ;;  %v153_v58 = vpop.xlane.xlu0 %152  ;;  %v250_v62 = vsel %vm249_vm1, %v210_v55, %v248_v53 }
  0xcf   :  { %v326_v61 = vsel %vm247_vm0, %v285_v54, %v281_v52  ;;  %v177_v0 = vsub.f32 0.0, %v153_v58  ;;  %v178_v1 = vsub.f32 0.0, %v155_v57  ;;  %v218_v2 = vrot.slane %v153_v58, %v607_v43 }
  0xd0   :  { %v327_v63 = vsel %vm249_vm1, %v289_v56, %v326_v61  ;;  %v252_v6 = vsel %vm251_vm2, %v214_v59, %v250_v62  ;;  %v222_v9 = vrot.slane %v155_v57, %v607_v43 }
  0xd1   :  { %v297_v3 = vrot.slane %v177_v0, %v607_v43  ;;  %v328_v7 = vsel %vm251_vm2, %v293_v60, %v327_v63  ;;  %v301_v10 = vrot.slane %v178_v1, %v607_v43  ;;  %v254_v11 = vsel %vm253_vm3, %v218_v2, %v252_v6 }
  0xd2   :  { %v161_v4 = vpop.xlane.xlu1 %160  ;;  %v157_v5 = vpop.xlane.xlu0 %156  ;;  %v256_v21 = vsel %vm255_vm4, %v222_v9, %v254_v11 }
  0xd3   :  { %v179_v8 = vsub.f32 0.0, %v157_v5  ;;  %v329_v12 = vsel %vm253_vm3, %v297_v3, %v328_v7  ;;  %v226_v13 = vrot.slane %v157_v5, %v607_v43  ;;  %v181_v20 = vsub.f32 0.0, %v161_v4 }
  0xd4   :  { %v330_v22 = vsel %vm255_vm4, %v301_v10, %v329_v12 }
  0xd5   :  { %v305_v14 = vrot.slane %v179_v8, %v607_v43  ;;  %v258_v24 = vsel %vm257_vm5, %v226_v13, %v256_v21  ;;  %v313_v33 = vrot.slane %v181_v20, %v607_v43 }
  0xd6   :  { %v159_v15 = vpop.xlane.xlu1 %158  ;;  %v163_v16 = vpop.xlane.xlu0 %162 }
  0xd7   :  { %v180_v17 = vsub.f32 0.0, %v159_v15  ;;  %v230_v18 = vrot.slane %v159_v15, %v607_v43  ;;  %v182_v19 = vsub.f32 0.0, %v163_v16  ;;  %v331_v25 = vsel %vm257_vm5, %v305_v14, %v330_v22 }
  0xd9   :  { %v309_v23 = vrot.slane %v180_v17, %v607_v43  ;;  %v317_v26 = vrot.slane %v182_v19, %v607_v43  ;;  %v260_v29 = vsel %vm259_vm6, %v230_v18, %v258_v24 }
  0xda   :  { %v165_v27 = vpop.xlane.xlu0 %164  ;;  %v167_v28 = vpop.xlane.xlu1 %166 }
  0xdb   :  { %v332_v30 = vsel %vm259_vm6, %v309_v23, %v331_v25  ;;  %v183_v31 = vsub.f32 0.0, %v165_v27  ;;  %v184_v32 = vsub.f32 0.0, %v167_v28  ;;  %v333_v38 = vsel %vm247_vm0, %v317_v26, %v313_v33 }
  0xdc   :  { %v338_v34 = vsel %vm171_vm7, %v260_v29, %v332_v30 }
  0xdd   :  { %v342_v35 = vand.u32 2147483647, %v338_v34  ;;  %v321_v36 = vrot.slane %v183_v31, %v607_v43  ;;  %v325_v37 = vrot.slane %v184_v32, %v607_v43  ;;  %v340_v61 = vmin.f32 %v338_v34, 0.0 }
  0xdf   :  { %v344_v39 = vsub.f32 0.0, %v342_v35  ;;  %v334_v40 = vsel %vm249_vm1, %v321_v36, %v333_v38 }
  0xe0   :  { %v335_v41 = vsel %vm251_vm2, %v325_v37, %v334_v40 }
  0xe1   :  { %v346_v42 = vmul.f32 1.442695, %v344_v39  ;;  %v343_v44 = vand.u32 2147483647, %v335_v41  ;;  %v341_v1 = vmin.f32 %v335_v41, 0.0 }
  0xe3   :  { %450 = vpow2.f32 %v346_v42  ;;  %v345_v45 = vsub.f32 0.0, %v343_v44 }
  0xe5   :  { %v348_v46 = vmul.f32 1.442695, %v345_v45 }
  0xe7   :  { %452 = vpow2.f32 %v348_v46 }
  0xf0   :  { %v451_v47 = vpop.eup %450 }
  0xf1   :  { %v350_v48 = vadd.f32 1.0, %v451_v47  ;;  %v353_v43 = vmul.f32 -0.5, %v451_v47  ;;  %v356_v53 = vand.u32 2147483647, %v451_v47 }
  0xf3   :  { %454 = vlog2.f32 %v350_v48  ;;  %v354_v51 = vadd.f32 1.0, %v353_v43  ;;  %vm357_vm8 = vcmp.lt.f32.partialorder %v356_v53, 0.0004427343 }
  0xf4   :  { %v453_v49 = vpop.eup %452 }
  0xf5   :  { %v359_v50 = vadd.f32 1.0, %v453_v49  ;;  %v362_v52 = vmul.f32 -0.5, %v453_v49  ;;  %v355_v56 = vmul.f32 %v451_v47, %v354_v51  ;;  %v365_v58 = vand.u32 2147483647, %v453_v49 }
  0xf7   :  { %456 = vlog2.f32 %v359_v50  ;;  %v363_v57 = vadd.f32 1.0, %v362_v52  ;;  %vm366_vm9 = vcmp.lt.f32.partialorder %v365_v58, 0.0004427343 }
  0xf9   :  { %v364_v63 = vmul.f32 %v453_v49, %v363_v57 }
 0x100   :  { %v455_v54 = vpop.eup %454 }
 0x101   :  { %v352_v55 = vmul.f32 0.6931472, %v455_v54 }
 0x103   :  { %v358_v59 = vsel %vm357_vm8, %v355_v56, %v352_v55 }
 0x104   :  { %v457_v60 = vpop.eup %456  ;;  %v368_v0 = vsub.f32 %v340_v61, %v358_v59 }
 0x105   :  { %v361_v62 = vmul.f32 0.6931472, %v457_v60 }
 0x106   :  { %v371_v4 = vsel %vm370_vm10, %v368_v0, 0.0 }
 0x107   :  { %v367_v2 = vsel %vm366_vm9, %v364_v63, %v361_v62 }
 0x108   :  { %v369_v3 = vsub.f32 %v341_v1, %v367_v2 }
 0x10a   :  { %v373_v5 = vsel %vm372_vm11, %v369_v3, 0.0 }
 0x10b   :  { %v374_v6 = vadd.f32 %v373_v5, %v371_v4 }
 0x10d   :  { %v375_v7 = vrot.slane %v374_v6, 4 }
 0x10f   :  { %v376_v8 = vadd.f32 %v375_v7, %v374_v6 }
 0x111   :  { %v377_v9 = vrot.slane %v376_v8, 2 }
 0x113   :  { %v378_v10 = vadd.f32 %v377_v9, %v376_v8 }
 0x115   :  { %v379_v11 = vrot.slane %v378_v10, 1 }
 0x117   :  { %v380_v12 = vadd.f32 %v379_v11, %v378_v10 }
 0x119   :  { %382 = vst.msk [vmem:[%s645_s4] sm:$0x1] %vm381_vm12, %v380_v12 }

</bundles_post_ra>
